<compile_context>
chip_gen: v6e
topology: v6e:2x2x1
jax: 0.10.0
libtpu: 0.0.40
codegen_flags: <defaults>
</compile_context>

<pallas_src>
import jax
import jax.numpy as jnp
from jax import lax
from jax.experimental import pallas as pl
from jax.experimental.pallas import tpu as pltpu


def _linear_kernel(x_ref, w_ref, b_ref, o_ref):
    # x_ref: (tb, in_dim)        VMEM tile of the batch
    # w_ref: (n_class, in_dim)   PyTorch-layout weight, VMEM-resident across steps
    # b_ref: (n_class, 1)        bias column, VMEM-resident across steps
    # o_ref: (n_class, tb)       transposed output tile (lane-dense last dim = tb)
    acc = lax.dot_general(
        w_ref[...], x_ref[...],
        dimension_numbers=(((1,), (1,)), ((), ())),   # W @ x^T on the MXU
        preferred_element_type=jnp.float32,
    )
    o_ref[...] = (acc + b_ref[...]).astype(o_ref.dtype)


def _choose_batch_tile(B, block_b):
    """Pick the batch tile. Multiples of 128 keep the transposed output tile
    lane-dense; a full-extent block is always legal for small B."""
    if B > block_b:
        return block_b
    # Single-block case: if B is large enough and splits cleanly into two
    # 128-multiple halves, use two grid steps so v7x's 2nd TensorCore has work.
    if B >= 512 and B % 256 == 0:
        return B // 2
    return B


def logistic_regression_forward(x, weight, bias, *, block_b=2048):
    """out = x @ weight.T + bias   (exactly nn.Linear semantics).

    x:      (B, in_dim)       float32
    weight: (n_class, in_dim) float32   (PyTorch layout, used as-is)
    bias:   (n_class,)        float32
    returns (B, n_class)      float32
    """
    B, in_dim = x.shape
    n_class = weight.shape[0]
    assert block_b % 128 == 0, "block_b must be a multiple of 128 (lane-dense output)"
    b_col = bias.reshape(n_class, 1)  # column vector for the transposed-output layout

    tb = _choose_batch_tile(B, block_b)

    cost = pl.CostEstimate(
        flops=2 * B * in_dim * n_class,
        transcendentals=0,
        bytes_accessed=4 * (B * in_dim + n_class * in_dim + n_class + B * n_class),
    )

    out_t = pl.pallas_call(
        _linear_kernel,
        out_shape=jax.ShapeDtypeStruct((n_class, B), x.dtype),
        grid_spec=pl.GridSpec(
            grid=(pl.cdiv(B, tb),),
            in_specs=[
                pl.BlockSpec((tb, in_dim), lambda i: (i, 0)),        # x: tiled over batch
                pl.BlockSpec((n_class, in_dim), lambda i: (0, 0)),   # W: resident
                pl.BlockSpec((n_class, 1), lambda i: (0, 0)),        # b: resident
            ],
            out_specs=pl.BlockSpec((n_class, tb), lambda i: (0, i)),  # lane-dense tile
        ),
        compiler_params=pltpu.CompilerParams(
            # Batch axis is independent -> shard across TensorCores on v7x.
            dimension_semantics=("parallel",),
        ),
        cost_estimate=cost,
    )(x, weight, b_col)

    # Back to nn.Linear's (B, n_class) layout; tiny output, cheap XLA transpose.
    return out_t.T


if __name__ == "__main__":
    key = jax.random.PRNGKey(0)
    k_x, k_w, k_b, k_x2 = jax.random.split(key, 4)

    batch, in_dim, n_class = 8, 32, 16

    x = jax.random.normal(k_x, (batch, in_dim), dtype=jnp.float32)
    # Deterministic parameter init (mimics nn.Linear's uniform(-1/sqrt(in_dim), ...)).
    bound = 1.0 / jnp.sqrt(in_dim)
    weight = jax.random.uniform(k_w, (n_class, in_dim), jnp.float32, -bound, bound)
    bias = jax.random.uniform(k_b, (n_class,), jnp.float32, -bound, bound)

    # Small-batch case (single full-extent block; fixed-overhead dominated by design).
    out = jax.block_until_ready(logistic_regression_forward(x, weight, bias))
    ref = x @ weight.T + bias
    assert out.shape == (batch, n_class)
    assert jnp.allclose(out, ref, atol=1e-5, rtol=1e-5)

    # Tiled case: exercises grid > 1 with the batch axis pipelined / TC-parallel
    # and lane-dense (n_class, 2048) output tiles.
    big_b = 4096
    x_big = jax.random.normal(k_x2, (big_b, in_dim), dtype=jnp.float32)
    out_big = jax.block_until_ready(logistic_regression_forward(x_big, weight, bias))
    ref_big = x_big @ weight.T + bias
    assert out_big.shape == (big_b, n_class)
    assert jnp.allclose(out_big, ref_big, atol=1e-5, rtol=1e-5)

    print("KERNEL_OK")
</pallas_src>

<mosaic_0001>
module attributes {stable_mosaic.version = 11 : i64} {
  func.func @_linear_kernel(%arg0: i32, %arg1: memref<8x32xf32, #tpu.memory_space<vmem>>, %arg2: memref<16x32xf32, #tpu.memory_space<vmem>>, %arg3: memref<16x1xf32, #tpu.memory_space<vmem>>, %arg4: memref<16x8xf32, #tpu.memory_space<vmem>>) attributes {dimension_semantics = [#tpu.dimension_semantics<parallel>], iteration_bounds = array<i64: 1>, scalar_prefetch = 0 : i64, scratch_operands = 0 : i64, tpu.core_type = #tpu.core_type<tc>, window_params = [{transform_indices = @transform_0, window_bounds = array<i64: 8, 32>}, {pipeline_mode = #tpu.pipeline_mode<synchronous>, transform_indices = @transform_1, window_bounds = array<i64: 16, 32>}, {pipeline_mode = #tpu.pipeline_mode<synchronous>, transform_indices = @transform_2, window_bounds = array<i64: 16, 1>}, {transform_indices = @transform_3, window_bounds = array<i64: 16, 8>}]} {
    %c0 = arith.constant 0 : index
    %c0_0 = arith.constant 0 : index
    %0 = vector.load %arg2[%c0, %c0_0] : memref<16x32xf32, #tpu.memory_space<vmem>>, vector<16x32xf32>
    %c0_1 = arith.constant 0 : index
    %c0_2 = arith.constant 0 : index
    %1 = vector.load %arg1[%c0_1, %c0_2] : memref<8x32xf32, #tpu.memory_space<vmem>>, vector<8x32xf32>
    %cst = arith.constant dense<0.000000e+00> : vector<16x8xf32>
    %2 = tpu.matmul %0, %1, %cst {dimension_numbers = #tpu.dot_dimension_numbers<[1], [1], [0], [0], [0, 0, 1, 0], [], []>} : vector<16x32xf32>, vector<8x32xf32>, vector<16x8xf32> -> vector<16x8xf32>
    %c0_3 = arith.constant 0 : index
    %c0_4 = arith.constant 0 : index
    %3 = vector.load %arg3[%c0_3, %c0_4] : memref<16x1xf32, #tpu.memory_space<vmem>>, vector<16x1xf32>
    %4 = vector.broadcast %3 : vector<16x1xf32> to vector<16x8xf32>
    %5 = arith.addf %2, %4 : vector<16x8xf32>
    %c0_5 = arith.constant 0 : index
    %c0_6 = arith.constant 0 : index
    %6 = vector.load %arg4[%c0_5, %c0_6] : memref<16x8xf32, #tpu.memory_space<vmem>>, vector<16x8xf32>
    tpu.vector_store %arg4[%c0_5, %c0_6], %5 {strides = array<i32>} : memref<16x8xf32, #tpu.memory_space<vmem>>, vector<16x8xf32>,
    return
  }
  func.func @transform_0(%arg0: i32) -> (i32, i32) {
    %c0_i32 = arith.constant 0 : i32
    %c0_i32_0 = arith.constant 0 : i32
    return %arg0, %c0_i32 : i32, i32
  }
  func.func @transform_1(%arg0: i32) -> (i32, i32) {
    %c0_i32 = arith.constant 0 : i32
    %c0_i32_0 = arith.constant 0 : i32
    %c0_i32_1 = arith.constant 0 : i32
    return %c0_i32, %c0_i32_0 : i32, i32
  }
  func.func @transform_2(%arg0: i32) -> (i32, i32) {
    %c0_i32 = arith.constant 0 : i32
    %c0_i32_0 = arith.constant 0 : i32
    %c0_i32_1 = arith.constant 0 : i32
    return %c0_i32, %c0_i32_0 : i32, i32
  }
  func.func @transform_3(%arg0: i32) -> (i32, i32) {
    %c0_i32 = arith.constant 0 : i32
    %c0_i32_0 = arith.constant 0 : i32
    return %c0_i32, %arg0 : i32, i32
  }
}

</mosaic_0001>

<bundles_post_ra>
// kernel: tpu_custom_call.1
= control target key start
LH: loop header
LB: loop body
LE: loop exit
PB: predicated region body
PF: predicated region fallthrough
CT: control target
= control target key end

     0   :  { %8 = vsyncpa [#allocation3], 0  ;;  %s170_s12 = smov [#allocation2]   ;;  %s213_s0 = inlined_call_operand.hbm [shape: f32[8,32], index: 0, kind: input, shape index: {}]   ;;  %s214_s1 = inlined_call_operand.vmem [shape: f32[16,32], index: 1, kind: input, shape index: {}]   ;;  %s215_s2 = inlined_call_operand.vmem [shape: f32[16,1], index: 2, kind: input, shape index: {}]   ;;  %s216_s3 = inlined_call_operand.vmem [shape: f32[16,8], index: 3, kind: output, shape index: {}]  }
   0x1   :  { %s15_s13 = sshll.u32 %s170_s12, 4  ;;  %s16_s13 = int_to_ptr.vmem [resolvable:$true] %s15_s13 }
   0x2   :  { %s156_s14 = scalar_lea.vmem %s16_s13, 128  ;;  %p161_p1 = scmp.lt.s32.totalorder %s16_s13, %s16_s13 }
   0x3   :  { %p157_p0 = scmp.ne.s32.totalorder %s16_s13, %s156_s14  ;;  %p162_p2 = scmp.lt.s32.totalorder %s156_s14, %s156_s14 }
   0x5   :  { %p163_p3 = por %p162_p2, %p161_p1 }
   0x7   :  { %p164_p4 = pnand %p163_p3, %p157_p0 }
   0x9   :  { %167 = shalt.err (!%p164_p4)
}
   0xa   :  { %18 = dma.hbm_to_vmem [thread:$0]  %s213_s0, 128, %s16_s13, [#allocation3]  }
   0xb   :  { %168 = dma.done.wait [#allocation3], 128  }
   0xc   :  { %169 = vsyncadd [#allocation3], 4294967168  ;;  %v171_v0 = vmov 0   ;;  %vm41_vm0 = vcmask 261120   ;;  %v28_v1 = vld [vmem:[#allocation2] sm:$0xff]  ;;  %v27_v4 = vld [vmem:[%s214_s1 + $0x8] sm:$0xff] }
   0xd   :  { %147 = vset.pattern.permute.xlu0 %v171_v0  ;;  %v26_v2 = vld [vmem:[%s214_s1] sm:$0xff]  ;;  %140 = vmatprep.subr.msk.mxu0 %vm41_vm0, %v28_v1  ;;  %v30_v5 = vld [vmem:[%s215_s2 + $0x8] sm:$0xff]  ;;  %vm126_vm1 = vcmask 64512  }
   0xe   :  { %142 = vmatprep.mubr.msk.f32.mxu0 %vm41_vm0, %v26_v2  ;;  %v29_v3 = vld [vmem:[%s215_s2] sm:$0xff]  ;;  %141 = vmatpush3.xpose.msk.msra.mxu0 %vm41_vm0, %v28_v1 }
   0xf   :  { %33 = vperm.xlu0 %147, %v29_v3  }
  0x11   :  { %143 = vmatmul.mubr.msk.f32.vlgmr.msra.gmra.mxu0 %vm41_vm0, %v27_v4 }
  0x13   :  { %38 = vperm.xlu0 %147, %v30_v5  }
  0x8a   :  { %v34_v6 = vpop.permute.xlu0 %33 }
  0x8e   :  { %v39_v7 = vpop.permute.xlu0 %38 }
  0xd1   :  { %v144_v8 = vpop.f32.mrf.mxu0 }
  0xd2   :  { %v123_v9 = vadd.f32 %v144_v8, %v39_v7 }
  0xd3   :  { %v117_v10 = vpop.f32.mrf.mxu0 }
  0xd4   :  { %128 = vst.msk [vmem:[%s216_s3 + $0x8] sm:$0xff] %vm126_vm1, %v123_v9  ;;  %v118_v11 = vadd.f32 %v117_v10, %v34_v6 }
  0xd6   :  { %127 = vst.msk [vmem:[%s216_s3] sm:$0xff] %vm126_vm1, %v118_v11 }
  0xd7   :  { %133 = vsyncpa [#allocation3], 1 }

</bundles_post_ra>
